<compile_context>
chip_gen: v5e
topology: v5e:2x2
jax: 0.10.0
libtpu: 0.0.40
codegen_flags: <defaults>
</compile_context>

<pallas_src>
import functools

import jax
import jax.numpy as jnp
from jax.experimental import pallas as pl
from jax.experimental.pallas import tpu as pltpu


# --------------------------------------------------------------------------
# Kernel: ReLU -> 3x3 conv (BN folded into weight/bias), one fused matmul.
# --------------------------------------------------------------------------
def _conv_block_kernel(x_ref, w_ref, b_ref, o_ref, *, H, WC):
    """One grid step = N_BLK images.

    x_ref: (N_BLK, H, WC)    lane-dense NHWC activations (WC = W*planes)
    w_ref: (3*WC, WC)        banded, BN-folded weight (3 ky taps stacked on K)
    b_ref: (1, WC)           BN-folded bias, tiled across W
    o_ref: (N_BLK, H, WC)    lane-dense output
    """
    nb = x_ref.shape[0]

    # ReLU first (zero-padding rows added below are unaffected: relu(0) == 0).
    x = jnp.maximum(x_ref[...].astype(jnp.float32), 0.0)          # (nb, H, WC)

    # H zero-padding folded into the kernel (no wrapper jnp.pad pass).
    zrow = jnp.zeros((nb, 1, WC), jnp.float32)
    xp = jnp.concatenate([zrow, x, zrow], axis=1)                  # (nb, H+2, WC)

    # Fuse the 3 ky row taps into one K = 3*WC matmul: concat shifted slices
    # along the lane/K axis; batch lands in the MXU M dimension.
    lhs = jnp.concatenate([xp[:, ky:ky + H, :] for ky in range(3)], axis=-1)
    lhs = lhs.reshape(nb * H, 3 * WC).astype(w_ref.dtype)          # (nb*H, 3*WC)

    acc = jnp.dot(lhs, w_ref[...], preferred_element_type=jnp.float32)
    acc = acc + b_ref[...].astype(jnp.float32)                     # (nb*H, WC)

    o_ref[...] = acc.reshape(nb, H, WC).astype(o_ref.dtype)


# --------------------------------------------------------------------------
# Parameter folding (plain JAX, one-time per edge).
# --------------------------------------------------------------------------
def fold_conv_bn(w_oihw, gamma, beta, running_mean, running_var, W,
                 eps=1e-5, mxu_dtype=jnp.float32):
    """Fold inference BN into the 3x3 conv and build the banded, fused weight.

    Returns:
      w_band:   (3*W*C, W*C)  row index = ky*W*C + wi*C + ci
      bias_row: (1, W*C)
    For planes >= ~32-64 pass mxu_dtype=jnp.bfloat16 (halves weight DMA/VMEM;
    MXU peak on v5e/v6e/v7x is bf16 — keep f32 accumulation in the kernel).
    """
    C = w_oihw.shape[0]
    scale = gamma.astype(jnp.float32) * jax.lax.rsqrt(
        running_var.astype(jnp.float32) + eps)                     # (C,)
    bias = beta.astype(jnp.float32) - running_mean.astype(jnp.float32) * scale
    # (ky, kx, ci, co), BN scale folded onto the output channel.
    w_hwio = jnp.transpose(w_oihw.astype(jnp.float32), (2, 3, 1, 0)) * scale

    # Banded weight on UNPADDED W lanes:
    #   band[ky, wi*C+ci, wo*C+co] = w[ky, wi-wo+1, ci, co]  if 0<=wi-wo+1<=2
    # (out-of-range kx taps, i.e. the W zero padding, are zeros in the band).
    wi = jnp.arange(W)[:, None]                                    # (W, 1)
    wo = jnp.arange(W)[None, :]                                    # (1, W)
    kx = wi - wo + 1                                               # (W, W)
    valid = ((kx >= 0) & (kx <= 2)).astype(jnp.float32)
    band = w_hwio[:, jnp.clip(kx, 0, 2)]                           # (3,W,W,C,C)
    band = band * valid[None, :, :, None, None]
    # (ky, wi, wo, ci, co) -> (ky, wi, ci, wo, co) -> (3*W*C, W*C)
    w_band = jnp.transpose(band, (0, 1, 3, 2, 4)).reshape(3 * W * C, W * C)
    w_band = w_band.astype(mxu_dtype)

    bias_row = jnp.tile(bias, W).reshape(1, W * C)
    return w_band, bias_row


def _pick_n_blk(n, max_blk=16):
    """Fattest batch block that divides N, keeps >= 2 grid steps when N >= 2
    (so v7x's two TensorCores both get work), and caps per-step VMEM."""
    if n <= 1:
        return 1
    target = max(1, min(max_blk, n // 2))
    for nb in range(target, 0, -1):
        if n % nb == 0:
            return nb
    return 1


# --------------------------------------------------------------------------
# Pallas wrapper: lane-dense in, lane-dense out.
# --------------------------------------------------------------------------
def conv_block_lane(x_lane, w_band, bias_row, *, n_blk=None):
    """ReLU -> conv3x3(pad=1, no bias) -> BN on lane-dense (N, H, W*C) input."""
    N, H, WC = x_lane.shape
    assert w_band.shape == (3 * WC, WC), w_band.shape
    if n_blk is None:
        n_blk = _pick_n_blk(N)
    assert N % n_blk == 0, (N, n_blk)
    grid = (N // n_blk,)

    kernel = functools.partial(_conv_block_kernel, H=H, WC=WC)

    itemsize = jnp.dtype(x_lane.dtype).itemsize
    flops = 2 * N * H * (3 * WC) * WC
    bytes_accessed = (N * H * WC * itemsize                       # x
                      + grid[0] * w_band.size * jnp.dtype(w_band.dtype).itemsize
                      + bias_row.size * 4
                      + N * H * WC * itemsize)                     # out

    return pl.pallas_call(
        kernel,
        out_shape=jax.ShapeDtypeStruct((N, H, WC), x_lane.dtype),
        grid_spec=pltpu.PrefetchScalarGridSpec(
            num_scalar_prefetch=0,
            grid=grid,
            in_specs=[
                pl.BlockSpec((n_blk, H, WC), lambda n: (n, 0, 0)),
                pl.BlockSpec((3 * WC, WC), lambda n: (0, 0)),
                pl.BlockSpec((1, WC), lambda n: (0, 0)),
            ],
            out_specs=pl.BlockSpec((n_blk, H, WC), lambda n: (n, 0, 0)),
        ),
        compiler_params=pltpu.CompilerParams(
            dimension_semantics=("parallel",)),
        cost_estimate=pl.CostEstimate(flops=int(flops), transcendentals=0,
                                      bytes_accessed=int(bytes_accessed)),
    )(x_lane, w_band, bias_row)


# --------------------------------------------------------------------------
# Graph-boundary layout helpers (only used at the ends of the DAG).
# --------------------------------------------------------------------------
def nchw_to_lane(x_nchw):
    N, C, H, W = x_nchw.shape
    return jnp.transpose(x_nchw, (0, 2, 3, 1)).reshape(N, H, W * C)


def lane_to_nchw(x_lane, C):
    N, H, WC = x_lane.shape
    return jnp.transpose(x_lane.reshape(N, H, WC // C, C), (0, 3, 1, 2))


# --------------------------------------------------------------------------
# Pure-JAX reference of one edge block (for validation).
# --------------------------------------------------------------------------
def _reference_block(x, w, gamma, beta, mean, var, eps=1e-5):
    xr = jnp.maximum(x, 0.0)
    y = jax.lax.conv_general_dilated(
        xr, w, window_strides=(1, 1), padding=((1, 1), (1, 1)),
        dimension_numbers=('NCHW', 'OIHW', 'NCHW'))
    inv = jax.lax.rsqrt(var + eps)
    bcast = lambda v: v[None, :, None, None]
    return (y - bcast(mean)) * bcast(inv) * bcast(gamma) + bcast(beta)


if __name__ == "__main__":
    # planes=8, 16x16 spatial (W * planes = 128 -> fully lane-dense tiles),
    # batch 4 so the grid has 2 "parallel" steps of 2 images each
    # (M = 2*16 = 32 rows per matmul, both v7x TensorCores busy).
    N, C, H, W = 4, 8, 16, 16
    NUM_EDGES = 2   # chain two DAG edges, lane-dense in between

    key = jax.random.PRNGKey(0)
    keys = jax.random.split(key, 1 + 5 * NUM_EDGES)

    x = jax.random.normal(keys[0], (N, C, H, W), dtype=jnp.float32)

    edge_params = []
    for e in range(NUM_EDGES):
        kw, kg, kb, km, kv = keys[1 + 5 * e: 6 + 5 * e]
        w = jax.random.normal(kw, (C, C, 3, 3), dtype=jnp.float32) * 0.1
        gamma = 1.0 + 0.1 * jax.random.normal(kg, (C,), dtype=jnp.float32)
        beta = 0.1 * jax.random.normal(kb, (C,), dtype=jnp.float32)
        mean = 0.1 * jax.random.normal(km, (C,), dtype=jnp.float32)
        var = jax.random.uniform(kv, (C,), dtype=jnp.float32,
                                 minval=0.5, maxval=1.5)
        edge_params.append((w, gamma, beta, mean, var))

    # Fold conv+BN once per edge (f32 at planes=8; use bf16 once planes>=32).
    folded = [fold_conv_bn(w, g, b, m, v, W)
              for (w, g, b, m, v) in edge_params]

    @jax.jit
    def forward(x_nchw, folded_params):
        # Convert to lane-dense once, run every edge lane-dense, convert back
        # once at the graph boundary (no per-layer layout round trips).
        y = nchw_to_lane(x_nchw)
        for (w_band, bias_row) in folded_params:
            y = conv_block_lane(y, w_band, bias_row)
        return lane_to_nchw(y, C)

    out = jax.block_until_ready(forward(x, folded))

    ref = x
    for p in edge_params:
        ref = _reference_block(ref, *p)
    ref = jax.block_until_ready(ref)

    assert out.shape == (N, C, H, W), out.shape
    assert jnp.allclose(out, ref, atol=5e-4, rtol=5e-4), (
        float(jnp.max(jnp.abs(out - ref))))

    print("KERNEL_OK")
</pallas_src>

<mosaic_0001>
module attributes {stable_mosaic.version = 11 : i64} {
  func.func @_conv_block_kernel(%arg0: i32, %arg1: memref<2x16x128xf32, #tpu.memory_space<vmem>>, %arg2: memref<384x128xf32, #tpu.memory_space<vmem>>, %arg3: memref<1x128xf32, #tpu.memory_space<vmem>>, %arg4: memref<2x16x128xf32, #tpu.memory_space<vmem>>) attributes {dimension_semantics = [#tpu.dimension_semantics<parallel>], iteration_bounds = array<i64: 2>, scalar_prefetch = 0 : i64, scratch_operands = 0 : i64, tpu.core_type = #tpu.core_type<tc>, window_params = [{transform_indices = @transform_0, window_bounds = array<i64: 2, 16, 128>}, {pipeline_mode = #tpu.pipeline_mode<synchronous>, transform_indices = @transform_1, window_bounds = array<i64: 384, 128>}, {pipeline_mode = #tpu.pipeline_mode<synchronous>, transform_indices = @transform_2, window_bounds = array<i64: 1, 128>}, {transform_indices = @transform_3, window_bounds = array<i64: 2, 16, 128>}]} {
    %c0 = arith.constant 0 : index
    %c0_0 = arith.constant 0 : index
    %c0_1 = arith.constant 0 : index
    %0 = vector.load %arg1[%c0, %c0_0, %c0_1] : memref<2x16x128xf32, #tpu.memory_space<vmem>>, vector<2x16x128xf32>
    %cst = arith.constant 0.000000e+00 : f32
    %1 = vector.broadcast %cst : f32 to vector<2x16x128xf32>
    %2 = arith.maximumf %0, %1 : vector<2x16x128xf32>
    %cst_2 = arith.constant 0.000000e+00 : f32
    %3 = vector.broadcast %cst_2 : f32 to vector<2x1x128xf32>
    %4 = tpu.concatenate %3, %2, %3 in 1 : vector<2x1x128xf32>, vector<2x16x128xf32>, vector<2x1x128xf32> -> vector<2x18x128xf32>
    %5 = vector.extract_strided_slice %4 {offsets = [0, 0, 0], sizes = [2, 16, 128], strides = [1, 1, 1]} : vector<2x18x128xf32> to vector<2x16x128xf32>
    %6 = vector.extract_strided_slice %4 {offsets = [0, 1, 0], sizes = [2, 16, 128], strides = [1, 1, 1]} : vector<2x18x128xf32> to vector<2x16x128xf32>
    %7 = vector.extract_strided_slice %4 {offsets = [0, 2, 0], sizes = [2, 16, 128], strides = [1, 1, 1]} : vector<2x18x128xf32> to vector<2x16x128xf32>
    %8 = tpu.concatenate %5, %6, %7 in 2 : vector<2x16x128xf32>, vector<2x16x128xf32>, vector<2x16x128xf32> -> vector<2x16x384xf32>
    %9 = vector.shape_cast %8 : vector<2x16x384xf32> to vector<32x384xf32>
    %c0_3 = arith.constant 0 : index
    %c0_4 = arith.constant 0 : index
    %10 = vector.load %arg2[%c0_3, %c0_4] : memref<384x128xf32, #tpu.memory_space<vmem>>, vector<384x128xf32>
    %cst_5 = arith.constant dense<0.000000e+00> : vector<32x128xf32>
    %11 = tpu.matmul %9, %10, %cst_5 {dimension_numbers = #tpu.dot_dimension_numbers<[1], [0], [0], [1], [0, 0, 1, 1], [], []>} : vector<32x384xf32>, vector<384x128xf32>, vector<32x128xf32> -> vector<32x128xf32>
    %c0_6 = arith.constant 0 : index
    %c0_7 = arith.constant 0 : index
    %12 = vector.load %arg3[%c0_6, %c0_7] : memref<1x128xf32, #tpu.memory_space<vmem>>, vector<1x128xf32>
    %13 = vector.broadcast %12 : vector<1x128xf32> to vector<32x128xf32>
    %14 = arith.addf %11, %13 : vector<32x128xf32>
    %15 = vector.shape_cast %14 : vector<32x128xf32> to vector<2x16x128xf32>
    %c0_8 = arith.constant 0 : index
    %c0_9 = arith.constant 0 : index
    %c0_10 = arith.constant 0 : index
    %16 = vector.load %arg4[%c0_8, %c0_9, %c0_10] : memref<2x16x128xf32, #tpu.memory_space<vmem>>, vector<2x16x128xf32>
    tpu.vector_store %arg4[%c0_8, %c0_9, %c0_10], %15 {strides = array<i32>} : memref<2x16x128xf32, #tpu.memory_space<vmem>>, vector<2x16x128xf32>,
    return
  }
  func.func @transform_0(%arg0: i32) -> (i32, i32, i32) {
    %c0_i32 = arith.constant 0 : i32
    %c0_i32_0 = arith.constant 0 : i32
    %c0_i32_1 = arith.constant 0 : i32
    return %arg0, %c0_i32, %c0_i32_0 : i32, i32, i32
  }
  func.func @transform_1(%arg0: i32) -> (i32, i32) {
    %c0_i32 = arith.constant 0 : i32
    %c0_i32_0 = arith.constant 0 : i32
    %c0_i32_1 = arith.constant 0 : i32
    return %c0_i32, %c0_i32_0 : i32, i32
  }
  func.func @transform_2(%arg0: i32) -> (i32, i32) {
    %c0_i32 = arith.constant 0 : i32
    %c0_i32_0 = arith.constant 0 : i32
    %c0_i32_1 = arith.constant 0 : i32
    return %c0_i32, %c0_i32_0 : i32, i32
  }
  func.func @transform_3(%arg0: i32) -> (i32, i32, i32) {
    %c0_i32 = arith.constant 0 : i32
    %c0_i32_0 = arith.constant 0 : i32
    %c0_i32_1 = arith.constant 0 : i32
    return %arg0, %c0_i32, %c0_i32_0 : i32, i32, i32
  }
}

</mosaic_0001>

<bundles_post_ra>
// kernel: forward.2
= control target key start
LH: loop header
LB: loop body
LE: loop exit
PB: predicated region body
PF: predicated region fallthrough
CT: control target
= control target key end

     0   :  { %s515_s12 = smov 0   ;;  %s716_s0 = inlined_call_operand.vmem [shape: f32[4,16,128], index: 0, kind: input, shape index: {}]   ;;  %s717_s1 = inlined_call_operand.vmem [shape: f32[384,128], index: 1, kind: input, shape index: {}]   ;;  %s718_s2 = inlined_call_operand.vmem [shape: f32[1,128], index: 2, kind: input, shape index: {}]   ;;  %s719_s3 = inlined_call_operand.vmem [shape: f32[4,16,128], index: 3, kind: output, shape index: {}]  }
   0x1 LB: > { %s443_s13 = sadd.s32 4294967295, %s493_s12   ;;  %p447_p0 = scmp.ge.s32.totalorder %s493_s12, 1  ;;  %s493_s12 = sphi %s515_s12, %s13_s12  }
   0x2   : > { %p139_p1 = scmp.lt.s32.totalorder %s493_s12, 3 }
   0x4   : > { %p140_p2 = pnand %p447_p0, %p139_p1 }
   0x5   : > { %s448_s20 = sshll.u32 (!%p140_p2), %s443_s13, 1 }
   0x6   : > { %143 = sbr.rel (%p140_p2) target bundleno = 202 (0xca), region = 32  ;;  %p166_p3 = scmp.lt.s32.totalorder (!%p140_p2), %s448_s20, 3 }
   0xb   : > { %v289_v0 = vld [vmem:[%s717_s1 + $0x178] sm:$0xff]  ;;  %v288_v2 = vld [vmem:[%s717_s1 + $0x170] sm:$0xff]  ;;  %v287_v5 = vld [vmem:[%s717_s1 + $0x168] sm:$0xff]  ;;  %s723_s20 = smov (!%p166_p3, %s448_s20), 3  ;;  %vm191_vm0 = vcmask 1040384   ;;  %vm227_vm1 = vcmask 1045504  }
   0xc   : > { %v257_v1 = vld [vmem:[%s717_s1 + $0x78] sm:$0xff]  ;;  %352 = vmatpush.msra.mxu2 %v289_v0  ;;  %v256_v3 = vld [vmem:[%s717_s1 + $0x70] sm:$0xff]  ;;  %v255_v6 = vld [vmem:[%s717_s1 + $0x68] sm:$0xff]  ;;  %s460_s26 = sshll.u32 %s723_s20, 4  ;;  %vm212_vm2 = vcmask 1046528  }
   0xd   : > { %294 = vmatpush.msra.mxu0 %v257_v1  ;;  %v273_v4 = vld [vmem:[%s717_s1 + $0xf8] sm:$0xff]  ;;  %462 = vmatpush.msra.mxu3 %v257_v1  ;;  %v272_v7 = vld [vmem:[%s717_s1 + $0xf0] sm:$0xff]  ;;  %v271_v8 = vld [vmem:[%s717_s1 + $0xe8] sm:$0xff]  ;;  %s601_s13 = scalar_lea.vmem %s716_s0, %s460_s26  ;;  %s177_s22 = scalar_lea.vmem %s719_s3, %s460_s26 }
   0xe   : > { %323 = vmatpush.msra.mxu1 %v273_v4  ;;  %353 = vmatpush.msra.mxu2 %v288_v2  ;;  %v286_v9 = vld [vmem:[%s717_s1 + $0x160] sm:$0xff]  ;;  %v285_v12 = vld [vmem:[%s717_s1 + $0x158] sm:$0xff]  ;;  %v284_v15 = vld [vmem:[%s717_s1 + $0x150] sm:$0xff] }
   0xf   : > { %295 = vmatpush.msra.mxu0 %v256_v3  ;;  %463 = vmatpush.msra.mxu3 %v256_v3  ;;  %v254_v10 = vld [vmem:[%s717_s1 + $0x60] sm:$0xff]  ;;  %v253_v13 = vld [vmem:[%s717_s1 + $0x58] sm:$0xff]  ;;  %v252_v16 = vld [vmem:[%s717_s1 + $0x50] sm:$0xff] }
  0x10   : > { %324 = vmatpush.msra.mxu1 %v272_v7  ;;  %354 = vmatpush.msra.mxu2 %v287_v5  ;;  %v270_v11 = vld [vmem:[%s717_s1 + $0xe0] sm:$0xff]  ;;  %v269_v14 = vld [vmem:[%s717_s1 + $0xd8] sm:$0xff]  ;;  %v268_v17 = vld [vmem:[%s717_s1 + $0xd0] sm:$0xff] }
  0x11   : > { %296 = vmatpush.msra.mxu0 %v255_v6  ;;  %464 = vmatpush.msra.mxu3 %v255_v6  ;;  %v283_v18 = vld [vmem:[%s717_s1 + $0x148] sm:$0xff]  ;;  %v282_v21 = vld [vmem:[%s717_s1 + $0x140] sm:$0xff]  ;;  %v281_v24 = vld [vmem:[%s717_s1 + $0x138] sm:$0xff] }
  0x12   : > { %325 = vmatpush.msra.mxu1 %v271_v8  ;;  %355 = vmatpush.msra.mxu2 %v286_v9  ;;  %v251_v19 = vld [vmem:[%s717_s1 + $0x48] sm:$0xff]  ;;  %v250_v22 = vld [vmem:[%s717_s1 + $0x40] sm:$0xff]  ;;  %v249_v25 = vld [vmem:[%s717_s1 + $0x38] sm:$0xff] }
  0x13   : > { %297 = vmatpush.msra.mxu0 %v254_v10  ;;  %465 = vmatpush.msra.mxu3 %v254_v10  ;;  %v267_v20 = vld [vmem:[%s717_s1 + $0xc8] sm:$0xff]  ;;  %v266_v23 = vld [vmem:[%s717_s1 + $0xc0] sm:$0xff]  ;;  %v265_v26 = vld [vmem:[%s717_s1 + $0xb8] sm:$0xff] }
  0x14   : > { %326 = vmatpush.msra.mxu1 %v270_v11  ;;  %356 = vmatpush.msra.mxu2 %v285_v12  ;;  %v179_v27 = vld [vmem:[%s601_s13] sm:$0xff]  ;;  %v180_v28 = vld [vmem:[%s601_s13 + $0x8] sm:$0xff]  ;;  %v280_v29 = vld [vmem:[%s717_s1 + $0x130] sm:$0xff] }
  0x15   : > { %298 = vmatpush.msra.mxu0 %v253_v13  ;;  %466 = vmatpush.msra.mxu3 %v253_v13  ;;  %v248_v30 = vld [vmem:[%s717_s1 + $0x30] sm:$0xff]  ;;  %v183_v31 = vmax.f32 %v179_v27, 0.0  ;;  %v184_v32 = vmax.f32 %v180_v28, 0.0  ;;  %v279_v34 = vld [vmem:[%s717_s1 + $0x128] sm:$0xff]  ;;  %v278_v39 = vld [vmem:[%s717_s1 + $0x120] sm:$0xff] }
  0x16   : > { %327 = vmatpush.msra.mxu1 %v269_v14  ;;  %357 = vmatpush.msra.mxu2 %v284_v15  ;;  %v264_v33 = vld [vmem:[%s717_s1 + $0xb0] sm:$0xff]  ;;  %v247_v35 = vld [vmem:[%s717_s1 + $0x28] sm:$0xff]  ;;  %v246_v40 = vld [vmem:[%s717_s1 + $0x20] sm:$0xff] }
  0x17   : > { %299 = vmatpush.msra.mxu0 %v252_v16  ;;  %467 = vmatpush.msra.mxu3 %v252_v16  ;;  %v192_v36 = vrot.slane %v183_v31, 7  ;;  %v193_v37 = vrot.slane %v184_v32, 7  ;;  %v263_v38 = vld [vmem:[%s717_s1 + $0xa8] sm:$0xff]  ;;  %v262_v41 = vld [vmem:[%s717_s1 + $0xa0] sm:$0xff]  ;;  %v277_v42 = vld [vmem:[%s717_s1 + $0x118] sm:$0xff] }
  0x18   : > { %328 = vmatpush.msra.mxu1 %v268_v17  ;;  %358 = vmatpush.msra.mxu2 %v283_v18  ;;  %v245_v43 = vld [vmem:[%s717_s1 + $0x18] sm:$0xff]  ;;  %v276_v47 = vld [vmem:[%s717_s1 + $0x110] sm:$0xff]  ;;  %v275_v52 = vld [vmem:[%s717_s1 + $0x108] sm:$0xff] }
  0x19   : > { %300 = vmatpush.msra.mxu0 %v251_v19  ;;  %468 = vmatpush.msra.mxu3 %v251_v19  ;;  %v194_v44 = vsel %vm191_vm0, %v192_v36, %v193_v37  ;;  %v204_v45 = vsel %vm191_vm0, 0.0, %v192_v36  ;;  %v261_v46 = vld [vmem:[%s717_s1 + $0x98] sm:$0xff]  ;;  %v244_v48 = vld [vmem:[%s717_s1 + $0x10] sm:$0xff]  ;;  %v243_v53 = vld [vmem:[%s717_s1 + $0x8] sm:$0xff]  ;;  %v206_v0 = vsel %vm191_vm0, %v193_v37, 0.0 }
  0x1a   : > { %329 = vmatpush.msra.mxu1 %v267_v20  ;;  %359 = vmatpush.msra.mxu2 %v282_v21  ;;  %v260_v49 = vld [vmem:[%s717_s1 + $0x90] sm:$0xff]  ;;  %v228_v50 = vrot.slane %v204_v45, 2  ;;  %v229_v51 = vrot.slane %v194_v44, 2  ;;  %v259_v54 = vld [vmem:[%s717_s1 + $0x88] sm:$0xff]  ;;  %v213_v55 = vrot.slane %v204_v45, 1  ;;  %v214_v56 = vrot.slane %v194_v44, 1  ;;  %vm683_vm3 = vmneg %vm191_vm0 }
  0x1b   : > { %301 = vmatpush.msra.mxu0 %v250_v22  ;;  %469 = vmatpush.msra.mxu3 %v250_v22  ;;  %v181_v57 = vld [vmem:[%s601_s13 + $0x10] sm:$0xff]  ;;  %v182_v58 = vld [vmem:[%s601_s13 + $0x18] sm:$0xff]  ;;  %v274_v59 = vld [vmem:[%s717_s1 + $0x100] sm:$0xff]  ;;  %v231_v4 = vrot.slane %v206_v0, 2  ;;  %v216_v7 = vrot.slane %v206_v0, 1 }
  0x1c   : > { %330 = vmatpush.msra.mxu1 %v266_v23  ;;  %360 = vmatpush.msra.mxu2 %v281_v24  ;;  %v242_v60 = vld [vmem:[%s717_s1] sm:$0xff]  ;;  %v230_v61 = vsel %vm227_vm1, %v228_v50, %v229_v51  ;;  %v185_v1 = vmax.f32 %v181_v57, 0.0  ;;  %v186_v2 = vmax.f32 %v182_v58, 0.0  ;;  %v215_v3 = vsel %vm212_vm2, %v213_v55, %v214_v56 }
  0x1d   : > { %302 = vmatpush.msra.mxu0 %v249_v25  ;;  %470 = vmatpush.msra.mxu3 %v249_v25  ;;  %v258_v63 = vld [vmem:[%s717_s1 + $0x80] sm:$0xff]  ;;  %v232_v8 = vsel %vm227_vm1, %v229_v51, %v231_v4  ;;  %v217_v11 = vsel %vm212_vm2, %v214_v56, %v216_v7 }
  0x1e   : > { %331 = vmatpush.msra.mxu1 %v265_v26  ;;  %361 = vmatpush.msra.mxu2 %v280_v29  ;;  %v195_v5 = vrot.slane %v185_v1, 7  ;;  %v196_v6 = vrot.slane %v186_v2, 7  ;;  %v486_v23 = vld [vmem:[%s718_s2] ss:$0 sm:$0xff] }
  0x1f   : > { %303 = vmatpush.msra.mxu0 %v248_v30  ;;  %471 = vmatpush.msra.mxu3 %v248_v30 }
  0x20   : > { %332 = vmatpush.msra.mxu1 %v264_v33  ;;  %362 = vmatpush.msra.mxu2 %v279_v34  ;;  %v197_v9 = vsel %vm191_vm0, %v195_v5, %v196_v6  ;;  %v205_v10 = vsel %vm191_vm0, 0.0, %v195_v5  ;;  %v207_v17 = vsel %vm191_vm0, %v196_v6, 0.0 }
  0x21   : > { %304 = vmatpush.msra.mxu0 %v247_v35  ;;  %472 = vmatpush.msra.mxu3 %v247_v35  ;;  %v233_v12 = vrot.slane %v205_v10, 2  ;;  %v234_v13 = vrot.slane %v197_v9, 2  ;;  %v218_v14 = vrot.slane %v205_v10, 1  ;;  %v219_v15 = vrot.slane %v197_v9, 1 }
  0x22   : > { %333 = vmatpush.msra.mxu1 %v263_v38  ;;  %363 = vmatpush.msra.mxu2 %v278_v39  ;;  %v236_v19 = vrot.slane %v207_v17, 2  ;;  %v221_v20 = vrot.slane %v207_v17, 1 }
  0x23   : > { %305 = vmatpush.msra.mxu0 %v246_v40  ;;  %473 = vmatpush.msra.mxu3 %v246_v40  ;;  %v235_v16 = vsel %vm227_vm1, %v233_v12, %v234_v13  ;;  %v220_v18 = vsel %vm212_vm2, %v218_v14, %v219_v15 }
  0x24   : > { %334 = vmatpush.msra.mxu1 %v262_v41  ;;  %364 = vmatpush.msra.mxu2 %v277_v42  ;;  %v237_v21 = vsel %vm227_vm1, %v234_v13, %v236_v19  ;;  %v222_v22 = vsel %vm212_vm2, %v219_v15, %v221_v20 }
  0x25   : > { %306 = vmatpush.msra.mxu0 %v245_v43  ;;  %474 = vmatpush.msra.mxu3 %v245_v43 }
  0x26   : > { %335 = vmatpush.msra.mxu1 %v261_v46  ;;  %365 = vmatpush.msra.mxu2 %v276_v47 }
  0x27   : > { %307 = vmatpush.msra.mxu0 %v244_v48  ;;  %475 = vmatpush.msra.mxu3 %v244_v48 }
  0x28   : > { %336 = vmatpush.msra.mxu1 %v260_v49  ;;  %366 = vmatpush.msra.mxu2 %v275_v52 }
  0x29   : > { %308 = vmatpush.msra.mxu0 %v243_v53  ;;  %476 = vmatpush.msra.mxu3 %v243_v53 }
  0x2a   : > { %337 = vmatpush.msra.mxu1 %v259_v54  ;;  %367 = vmatpush.msra.mxu2 %v274_v59 }
  0x2b   : > { %309 = vmatpush.msra.mxu0 %v242_v60  ;;  %368 = vmatmul.f32.vlgmr.msra.gmra.mxu2 %v230_v61 }
  0x2c   : > { %455 = vmatmul.msk.f32.vlgmr.msra.gmra.mxu0 %vm683_vm3, %v192_v36  ;;  %477 = vmatpush.msra.mxu3 %v242_v60 }
  0x2d   : > { %338 = vmatpush.msra.mxu1 %v258_v63  ;;  %313 = vmatmul.f32.vlgmr.msra.gmra.mxu3 %v194_v44 }
  0x2e   : > { %339 = vmatmul.f32.vlgmr.msra.gmra.mxu1 %v215_v3 }
  0x33   : > { %371 = vmatmul.f32.gmra.mxu2 %v232_v8 }
  0x35   : > { %457 = vmatmul.msk.f32.gmra.mxu3 %vm683_vm3, %v195_v5 }
  0x36   : > { %342 = vmatmul.f32.gmra.mxu1 %v217_v11 }
  0x3b   : > { %374 = vmatmul.f32.gmra.mxu2 %v235_v16 }
  0x3d   : > { %319 = vmatmul.f32.gmra.mxu3 %v197_v9 }
  0x3e   : > { %345 = vmatmul.f32.gmra.mxu1 %v220_v18 }
  0x43   : > { %377 = vmatmul.f32.gmra.mxu2 %v237_v21 }
  0x46   : > { %348 = vmatmul.f32.gmra.mxu1 %v222_v22 }
  0xa9   : > { %v311_v24 = vpop.f32.mrf.mxu0 }
  0xaa   : > { %v312_v25 = vadd.f32 %v486_v23, %v311_v24 }
  0xab   : > { %v340_v26 = vpop.f32.mrf.mxu1 }
  0xac   : > { %v341_v27 = vadd.f32 %v340_v26, %v312_v25 }
  0xae   : > { %v369_v28 = vpop.f32.mrf.mxu2 }
  0xaf   : > { %v370_v29 = vadd.f32 %v369_v28, %v341_v27 }
  0xb0   : > { %v314_v30 = vpop.f32.mrf.mxu3 }
  0xb1   : > { %381 = vst [vmem:[%s177_s22] sm:$0xff] %v370_v29  ;;  %v315_v31 = vadd.f32 %v486_v23, %v314_v30 }
  0xb3   : > { %v343_v32 = vpop.f32.mrf.mxu1 }
  0xb4   : > { %v344_v33 = vadd.f32 %v343_v32, %v315_v31 }
  0xb6   : > { %v372_v34 = vpop.f32.mrf.mxu2 }
  0xb7   : > { %v373_v35 = vadd.f32 %v372_v34, %v344_v33 }
  0xb8   : > { %v317_v36 = vpop.f32.mrf.mxu3 }
  0xb9   : > { %382 = vst [vmem:[%s177_s22 + $0x8] sm:$0xff] %v373_v35  ;;  %v318_v37 = vadd.f32 %v486_v23, %v317_v36 }
  0xbb   : > { %v346_v38 = vpop.f32.mrf.mxu1 }
  0xbc   : > { %v347_v39 = vadd.f32 %v346_v38, %v318_v37 }
  0xbe   : > { %v375_v40 = vpop.f32.mrf.mxu2 }
  0xbf   : > { %v376_v41 = vadd.f32 %v375_v40, %v347_v39 }
  0xc0   : > { %v320_v42 = vpop.f32.mrf.mxu3 }
  0xc1   : > { %383 = vst [vmem:[%s177_s22 + $0x10] sm:$0xff] %v376_v41  ;;  %v321_v43 = vadd.f32 %v486_v23, %v320_v42 }
  0xc3   : > { %v349_v44 = vpop.f32.mrf.mxu1 }
  0xc4   : > { %v350_v45 = vadd.f32 %v349_v44, %v321_v43 }
  0xc6   : > { %v378_v46 = vpop.f32.mrf.mxu2 }
  0xc7   : > { %v379_v47 = vadd.f32 %v378_v46, %v350_v45 }
  0xc9   : > { %384 = vst [vmem:[%s177_s22 + $0x18] sm:$0xff] %v379_v47 }
  0xca PF: > { %s13_s12 = sadd.s32 1, %s493_s12  }
  0xcb   : > { %p10_p4 = scmp.ge.s32.totalorder %s13_s12, 4  }
  0xcd   :  { %12 = sbr.rel (!%p10_p4) target bundleno = 1 (0x1), region = 62 }

</bundles_post_ra>
